<compile_context>
chip_gen: v5e
topology: v5e:2x2
jax: 0.10.0
libtpu: 0.0.40
codegen_flags: <defaults>
</compile_context>

<pallas_src>
import functools
import math

import jax
import jax.numpy as jnp
from jax.experimental import pallas as pl
from jax.experimental.pallas import tpu as pltpu


def attention_head_kernel(x_ref, wqkv_ref, bqkv_ref, o_ref, *, seq_len):
    Bt, S, Dp = x_ref.shape
    in_dt = x_ref.dtype

    # Flatten the batch tile into the sublane dim for one wide fused matmul.
    x = x_ref[...].reshape(Bt * S, Dp)                     # (Bt*S, Dp), input dtype

    # Fused QKV projection: contraction on last/first dims -> straight MXU,
    # f32 accumulation. Bias is already f32 (prepared once in the wrapper).
    qkv = jax.lax.dot_general(
        x, wqkv_ref[...],
        dimension_numbers=(((1,), (0,)), ((), ())),
        preferred_element_type=jnp.float32,
    ) + bqkv_ref[...]                                      # (Bt*S, 3*Dp), f32

    # PyTorch semantics: scale = q.size(1) ** 0.5 == sqrt(full sequence length).
    inv_scale = jnp.float32(1.0 / math.sqrt(float(seq_len)))

    # Fold the scale into q (cheap (S,Dp) VPU op instead of an (S,S) divide),
    # then cast MXU operands back to the input dtype. Slices are at Dp
    # (multiple-of-128) boundaries -> lane-aligned, no relayout.
    q = (qkv[:, :Dp] * inv_scale).astype(in_dt).reshape(Bt, S, Dp)
    k = qkv[:, Dp:2 * Dp].astype(in_dt).reshape(Bt, S, Dp)
    v = qkv[:, 2 * Dp:].astype(in_dt).reshape(Bt, S, Dp)

    # Batched scores; contraction over the last dims (no transpose needed).
    scores = jnp.einsum("bqd,bkd->bqk", q, k,
                        preferred_element_type=jnp.float32)   # (Bt, S, S), f32

    # Numerically stable softmax numerator in f32; normalization is deferred
    # until after the PV matmul (exact reciprocal on the (Bt,S,1) row sums).
    scores = scores - jnp.max(scores, axis=-1, keepdims=True)
    p = jnp.exp(scores)                                        # (Bt, S, S), f32
    l = jnp.sum(p, axis=-1, keepdims=True)                     # (Bt, S, 1), f32

    pv = jnp.einsum("bqk,bkd->bqd", p.astype(in_dt), v,
                    preferred_element_type=jnp.float32)        # (Bt, S, Dp), f32
    o_ref[...] = (pv * (jnp.float32(1.0) / l)).astype(o_ref.dtype)


def attention_head(x, wq, bq, wk, bk, wv, bv, *, batch_tile=None):
    """x: (B, S, D); wq/wk/wv: (D, D) in PyTorch (out, in) layout; biases: (D,)."""
    B, S, D = x.shape
    LANE = 128
    Dp = ((D + LANE - 1) // LANE) * LANE
    pad = Dp - D

    # One-time (XLA-side) packing: pre-transpose each weight to (in, out),
    # zero-pad to lane-aligned Dp, and fuse QKV into one (Dp, 3*Dp) weight.
    def pack_w(w):
        wt = w.T.astype(x.dtype)                               # (in, out)
        return jnp.pad(wt, ((0, pad), (0, pad))) if pad else wt

    def pack_b(b):
        bf = b.astype(jnp.float32)
        return jnp.pad(bf, (0, pad)) if pad else bf

    wqkv = jnp.concatenate([pack_w(wq), pack_w(wk), pack_w(wv)], axis=1)  # (Dp, 3*Dp)
    bqkv = jnp.concatenate([pack_b(bq), pack_b(bk), pack_b(bv)]).reshape(1, 3 * Dp)
    x_pad = jnp.pad(x, ((0, 0), (0, 0), (0, pad))) if pad else x          # (B, S, Dp)

    # Batch-tile heuristic:
    #  * S >= 128: one batch element per step (bounds the (Bt,S,S) footprint).
    #  * small S: pack batches to get >=128 rows into the fused projection.
    #  * whenever B >= 2, keep at least 2 grid steps so v7x's 2nd TC has work.
    if batch_tile is None:
        if S >= 128:
            batch_tile = 1
        else:
            batch_tile = min(B, max(1, pl.cdiv(128, S)))
        if B >= 2:
            batch_tile = min(batch_tile, max(1, B // 2))
    bt = max(1, min(B, batch_tile))
    while B % bt:
        bt -= 1
    Bt = bt

    # Size the scoped VMEM limit from the actual block (double-buffered x/out
    # blocks + fused params + f32 intermediates), with 2x headroom, capped at
    # 80% of the physical per-core VMEM (v7x: 64 MiB, v5e/v6e: 128 MiB).
    itemsize = x.dtype.itemsize
    est = (
        2 * 2 * Bt * S * Dp * itemsize                       # x + out, double buffered
        + 2 * (Dp * 3 * Dp) * itemsize + 2 * 3 * Dp * 4      # fused weight + bias
        + 4 * (Bt * S * 3 * Dp + 2 * Bt * S * S + Bt * S * Dp)  # f32 intermediates
    )
    try:
        vmem_cap = int(pltpu.get_tpu_info().vmem_capacity_bytes)
    except Exception:
        vmem_cap = 64 << 20   # conservative (v7x per-TC) fallback
    vmem_limit = int(max(16 << 20, min(int(0.8 * vmem_cap), 2 * est)))

    kernel = functools.partial(attention_head_kernel, seq_len=S)

    out_padded = pl.pallas_call(
        kernel,
        out_shape=jax.ShapeDtypeStruct((B, S, Dp), x.dtype),
        grid_spec=pltpu.PrefetchScalarGridSpec(
            num_scalar_prefetch=0,
            grid=(B // Bt,),
            in_specs=[
                pl.BlockSpec((Bt, S, Dp), lambda b: (b, 0, 0)),    # x (padded)
                pl.BlockSpec((Dp, 3 * Dp), lambda b: (0, 0)),      # fused W (in,out)
                pl.BlockSpec((1, 3 * Dp), lambda b: (0, 0)),       # fused bias (f32)
            ],
            out_specs=pl.BlockSpec((Bt, S, Dp), lambda b: (b, 0, 0)),
        ),
        compiler_params=pltpu.CompilerParams(
            dimension_semantics=("parallel",),
            vmem_limit_bytes=vmem_limit,
        ),
    )(x_pad, wqkv, bqkv)

    return out_padded[:, :, :D] if pad else out_padded


def attention_head_ref(x, wq, bq, wk, bk, wv, bv):
    """Pure-JAX reference mirroring the PyTorch forward exactly."""
    q = jnp.einsum("bsd,ed->bse", x, wq) + bq
    k = jnp.einsum("bsd,ed->bse", x, wk) + bk
    v = jnp.einsum("bsd,ed->bse", x, wv) + bv
    scale = q.shape[1] ** 0.5                         # sqrt(S), PyTorch semantics
    scores = jnp.einsum("bqd,bkd->bqk", q, k) / scale
    probs = jax.nn.softmax(scores, axis=-1)
    return jnp.einsum("bqk,bkd->bqd", probs, v)


if __name__ == "__main__":
    B, S, D = 2, 8, 32  # batch, seq, hidden (size=D)

    key = jax.random.PRNGKey(0)
    kx, kwq, kbq, kwk, kbk, kwv, kbv = jax.random.split(key, 7)

    # Deterministic nn.Linear-style init: U(-1/sqrt(in), 1/sqrt(in))
    bound = 1.0 / math.sqrt(D)
    x = jax.random.normal(kx, (B, S, D), dtype=jnp.float32)
    wq = jax.random.uniform(kwq, (D, D), jnp.float32, -bound, bound)
    bq = jax.random.uniform(kbq, (D,), jnp.float32, -bound, bound)
    wk = jax.random.uniform(kwk, (D, D), jnp.float32, -bound, bound)
    bk = jax.random.uniform(kbk, (D,), jnp.float32, -bound, bound)
    wv = jax.random.uniform(kwv, (D, D), jnp.float32, -bound, bound)
    bv = jax.random.uniform(kbv, (D,), jnp.float32, -bound, bound)

    out = attention_head(x, wq, bq, wk, bk, wv, bv)
    out = jax.block_until_ready(out)

    ref = attention_head_ref(x, wq, bq, wk, bk, wv, bv)
    assert out.shape == (B, S, D)
    # All math is f32 with f32 accumulation and an exact softmax normalization,
    # so a tight tolerance holds (differences are reduction-order only).
    assert jnp.allclose(out, ref, atol=1e-4, rtol=1e-4), (
        float(jnp.max(jnp.abs(out - ref))))

    print("KERNEL_OK")
</pallas_src>

<mosaic_0001>
module attributes {stable_mosaic.version = 11 : i64} {
  func.func @attention_head_kernel(%arg0: i32, %arg1: memref<1x8x128xf32, #tpu.memory_space<vmem>>, %arg2: memref<128x384xf32, #tpu.memory_space<vmem>>, %arg3: memref<1x384xf32, #tpu.memory_space<vmem>>, %arg4: memref<1x8x128xf32, #tpu.memory_space<vmem>>) attributes {dimension_semantics = [#tpu.dimension_semantics<parallel>], iteration_bounds = array<i64: 2>, scalar_prefetch = 0 : i64, scratch_operands = 0 : i64, tpu.core_type = #tpu.core_type<tc>, window_params = [{transform_indices = @transform_0, window_bounds = array<i64: 1, 8, 128>}, {pipeline_mode = #tpu.pipeline_mode<synchronous>, transform_indices = @transform_1, window_bounds = array<i64: 128, 384>}, {pipeline_mode = #tpu.pipeline_mode<synchronous>, transform_indices = @transform_2, window_bounds = array<i64: 1, 384>}, {transform_indices = @transform_3, window_bounds = array<i64: 1, 8, 128>}]} {
    %c0 = arith.constant 0 : index
    %c0_0 = arith.constant 0 : index
    %c0_1 = arith.constant 0 : index
    %0 = vector.load %arg1[%c0, %c0_0, %c0_1] : memref<1x8x128xf32, #tpu.memory_space<vmem>>, vector<1x8x128xf32>
    %1 = vector.shape_cast %0 : vector<1x8x128xf32> to vector<8x128xf32>
    %c0_2 = arith.constant 0 : index
    %c0_3 = arith.constant 0 : index
    %2 = vector.load %arg2[%c0_2, %c0_3] : memref<128x384xf32, #tpu.memory_space<vmem>>, vector<128x384xf32>
    %cst = arith.constant dense<0.000000e+00> : vector<8x384xf32>
    %3 = tpu.matmul %1, %2, %cst {dimension_numbers = #tpu.dot_dimension_numbers<[1], [0], [0], [1], [0, 0, 1, 1], [], []>} : vector<8x128xf32>, vector<128x384xf32>, vector<8x384xf32> -> vector<8x384xf32>
    %c0_4 = arith.constant 0 : index
    %c0_5 = arith.constant 0 : index
    %4 = vector.load %arg3[%c0_4, %c0_5] : memref<1x384xf32, #tpu.memory_space<vmem>>, vector<1x384xf32>
    %5 = vector.broadcast %4 : vector<1x384xf32> to vector<8x384xf32>
    %6 = arith.addf %3, %5 : vector<8x384xf32>
    %7 = vector.extract_strided_slice %6 {offsets = [0, 0], sizes = [8, 128], strides = [1, 1]} : vector<8x384xf32> to vector<8x128xf32>
    %cst_6 = arith.constant 0.353553385 : f32
    %8 = vector.broadcast %cst_6 : f32 to vector<8x128xf32>
    %9 = arith.mulf %7, %8 : vector<8x128xf32>
    %10 = vector.shape_cast %9 : vector<8x128xf32> to vector<1x8x128xf32>
    %11 = vector.extract_strided_slice %6 {offsets = [0, 128], sizes = [8, 128], strides = [1, 1]} : vector<8x384xf32> to vector<8x128xf32>
    %12 = vector.shape_cast %11 : vector<8x128xf32> to vector<1x8x128xf32>
    %13 = vector.extract_strided_slice %6 {offsets = [0, 256], sizes = [8, 128], strides = [1, 1]} : vector<8x384xf32> to vector<8x128xf32>
    %14 = vector.shape_cast %13 : vector<8x128xf32> to vector<1x8x128xf32>
    "tpu.trace_start"() <{level = 10 : i32, message = "bqd,bkd->bqk"}> : () -> ()
    %cst_7 = arith.constant dense<0.000000e+00> : vector<1x8x8xf32>
    %15 = tpu.matmul %10, %12, %cst_7 {dimension_numbers = #tpu.dot_dimension_numbers<[2], [2], [1], [1], [0, 0, 0, 1, 1, 1], [0], [0]>} : vector<1x8x128xf32>, vector<1x8x128xf32>, vector<1x8x8xf32> -> vector<1x8x8xf32>
    "tpu.trace_stop"() : () -> ()
    %cst_8 = arith.constant dense<0xFF800000> : vector<1x8xf32>
    %16 = vector.multi_reduction <maximumf>, %15, %cst_8 [2] : vector<1x8x8xf32> to vector<1x8xf32>
    %17 = vector.shape_cast %16 : vector<1x8xf32> to vector<1x8x1xf32>
    %18 = vector.broadcast %17 : vector<1x8x1xf32> to vector<1x8x8xf32>
    %19 = arith.subf %15, %18 : vector<1x8x8xf32>
    %20 = math.exp %19 : vector<1x8x8xf32>
    %cst_9 = arith.constant dense<0.000000e+00> : vector<1x8xf32>
    %21 = vector.multi_reduction <add>, %20, %cst_9 [2] : vector<1x8x8xf32> to vector<1x8xf32>
    %22 = vector.shape_cast %21 : vector<1x8xf32> to vector<1x8x1xf32>
    "tpu.trace_start"() <{level = 10 : i32, message = "bqk,bkd->bqd"}> : () -> ()
    %cst_10 = arith.constant dense<0.000000e+00> : vector<1x8x128xf32>
    %23 = tpu.matmul %20, %14, %cst_10 {dimension_numbers = #tpu.dot_dimension_numbers<[2], [1], [1], [2], [0, 0, 0, 1, 1, 2], [0], [0]>} : vector<1x8x8xf32>, vector<1x8x128xf32>, vector<1x8x128xf32> -> vector<1x8x128xf32>
    "tpu.trace_stop"() : () -> ()
    %cst_11 = arith.constant 1.000000e+00 : f32
    %24 = vector.broadcast %cst_11 : f32 to vector<1x8x1xf32>
    %25 = arith.divf %24, %22 : vector<1x8x1xf32>
    %26 = vector.broadcast %25 : vector<1x8x1xf32> to vector<1x8x128xf32>
    %27 = arith.mulf %23, %26 : vector<1x8x128xf32>
    %c0_12 = arith.constant 0 : index
    %c0_13 = arith.constant 0 : index
    %c0_14 = arith.constant 0 : index
    %28 = vector.load %arg4[%c0_12, %c0_13, %c0_14] : memref<1x8x128xf32, #tpu.memory_space<vmem>>, vector<1x8x128xf32>
    tpu.vector_store %arg4[%c0_12, %c0_13, %c0_14], %27 {strides = array<i32>} : memref<1x8x128xf32, #tpu.memory_space<vmem>>, vector<1x8x128xf32>,
    return
  }
  func.func @transform_0(%arg0: i32) -> (i32, i32, i32) {
    %c0_i32 = arith.constant 0 : i32
    %c0_i32_0 = arith.constant 0 : i32
    %c0_i32_1 = arith.constant 0 : i32
    return %arg0, %c0_i32, %c0_i32_0 : i32, i32, i32
  }
  func.func @transform_1(%arg0: i32) -> (i32, i32) {
    %c0_i32 = arith.constant 0 : i32
    %c0_i32_0 = arith.constant 0 : i32
    %c0_i32_1 = arith.constant 0 : i32
    return %c0_i32, %c0_i32_0 : i32, i32
  }
  func.func @transform_2(%arg0: i32) -> (i32, i32) {
    %c0_i32 = arith.constant 0 : i32
    %c0_i32_0 = arith.constant 0 : i32
    %c0_i32_1 = arith.constant 0 : i32
    return %c0_i32, %c0_i32_0 : i32, i32
  }
  func.func @transform_3(%arg0: i32) -> (i32, i32, i32) {
    %c0_i32 = arith.constant 0 : i32
    %c0_i32_0 = arith.constant 0 : i32
    %c0_i32_1 = arith.constant 0 : i32
    return %arg0, %c0_i32, %c0_i32_0 : i32, i32, i32
  }
}

</mosaic_0001>

<bundles_post_ra>
// kernel: tpu_custom_call.1
= control target key start
LH: loop header
LB: loop body
LE: loop exit
PB: predicated region body
PF: predicated region fallthrough
CT: control target
= control target key end

     0   :  { %8 = vsyncpa [#allocation3], 0  ;;  %s940_s0 = inlined_call_operand.hbm [shape: f32[2,8,128], index: 0, kind: input, shape index: {}]   ;;  %s941_s1 = inlined_call_operand.hbm [shape: f32[128,384], index: 1, kind: input, shape index: {}]   ;;  %s942_s2 = inlined_call_operand.hbm [shape: f32[1,384], index: 2, kind: input, shape index: {}]   ;;  %s943_s3 = inlined_call_operand.hbm [shape: f32[2,8,128], index: 3, kind: output, shape index: {}]  }
   0x1   :  { %10 = vsyncpa [#allocation3 + $0x1], 0 }
   0x2   :  { %11 = vsyncpa [#allocation6], 0 }
   0x3   :  { %12 = vsyncpa [#allocation4], 0 }
   0x4   :  { %14 = vsyncpa [#allocation4 + $0x1], 0  ;;  %s788_s12 = smov 0   ;;  %s790_s13 = smov 0  }
   0x5   :  { %s792_s14 = smov 0   ;;  %s794_s15 = smov 0  }
   0x6 LB: > { %s130_s18 = sshll.u32 %s941_s1, 4  ;;  %s812_s19 = sadd.s32 4294967295, %s762_s15   ;;  %s762_s15 = sphi %s794_s15, %s954_s15   ;;  %s758_s14 = sphi %s792_s14, %s953_s14   ;;  %s754_s13 = sphi %s790_s13, %s952_s13   ;;  %s750_s12 = sphi %s788_s12, %s951_s12   ;;  %s131_s18 = int_to_ptr.hbm [resolvable:$true] %s130_s18 }
   0x7   : > { %p513_p0 = scmp.ge.s32.totalorder %s762_s15, 1  ;;  %p41_p1 = scmp.eq.s32.totalorder %s812_s19, 0 }
   0x8   : > { %p119_p2 = scmp.lt.s32.totalorder %s762_s15, 3  ;;  %s764_s21 = smov [#allocation5]  }
   0x9   : > { %s132_s22 = sshll.u32 %s764_s21, 4  ;;  %s145_s25 = sshll.u32 %s942_s2, 4  ;;  %s133_s22 = int_to_ptr.vmem [resolvable:$true] %s132_s22  ;;  %s146_s25 = int_to_ptr.hbm [resolvable:$true] %s145_s25 }
   0xa   : > { %p817_p3 = pnand %p513_p0, %p119_p2  ;;  %s765_s26 = smov [#allocation7]  }
   0xb   : > { %s147_s27 = sshll.u32 %s765_s26, 4  ;;  %s766_s28 = smov 384   ;;  %s148_s27 = int_to_ptr.vmem [resolvable:$true] %s147_s27 }
   0xc   : > { %p541_p4 = pneg %p817_p3  ;;  %s767_s29 = smov 24  }
   0xd   : > { %s512_s30 = sadd.s32 4294967294, %s762_s15   ;;  %s831_s4 = sadd.s32 1, %s762_s15  }
   0xe   : > { %p542_p6 = pnand %p541_p4, %p41_p1  ;;  %s24_s5 = ssub.s32 %s762_s15, %s831_s4 }
   0xf   : > { %s27_s6 = sadd.s32 1, %s758_s14  ;;  %p25_p7 = scmp.eq.s32.totalorder %s24_s5, 0 }
  0x10   : > { %544 = dma.hbm_to_vmem [thread:$0]  (!%p542_p6), %s131_s18, 6144, %s133_s22, [#allocation6], %s766_s28, %s766_s28, %s767_s29  }
  0x11   : > { %547 = dma.hbm_to_vmem [thread:$0]  (!%p542_p6), %s146_s25, 48, %s148_s27, [#allocation6]  }
  0x12   : > { %p34_p8 = scmp.ne.s32.totalorder %s758_s14, %s754_s13  ;;  %p35_p9 = scmp.eq.s32.totalorder %s762_s15, 0 }
  0x13   : > { %p40_p10 = scmp.ne.s32.totalorder %s754_s13, %s750_s12  ;;  %p106_p13 = scmp.eq.s32.totalorder %s812_s19, 1 }
  0x14   : > { %s842_s7 = scalar_select %p25_p7, %s758_s14, %s27_s6  }
  0x15   : > { %p844_p11 = por %p35_p9, %p34_p8  ;;  %p850_p12 = por %p41_p1, %p40_p10 }
  0x16   : > { %p112_p0 = scmp.eq.s32.totalorder %s512_s30, 1  ;;  %p558_p2 = scmp.lt.s32.totalorder %s762_s15, 2 }
  0x17   : > { %s158_s10 = sand.u32 1, %s758_s14   ;;  %p857_p4 = por %p106_p13, %p34_p8 }
  0x18   : > { %p861_p6 = por %p112_p0, %p40_p10  ;;  %s517_s17 = sshll.u32 %s158_s10, 3 }
  0x19   : > { %s518_s18 = sshll.u32 %s762_s15, 3  ;;  %s162_s24 = scalar_lea.vmem [#allocation2], %s517_s17 }
  0x1a   : > { %s166_s23 = scalar_lea.hbm %s940_s0, %s518_s18  ;;  %s170_s25 = sshll.u32 %s162_s24, 4  ;;  %s171_s25 = int_to_ptr.vmem [resolvable:$true] %s170_s25 }
  0x1b   : > { %s168_s26 = sshll.u32 %s166_s23, 4  ;;  %p871_p7 = pnand %p558_p2, %p844_p11  ;;  %s169_s26 = int_to_ptr.hbm [resolvable:$true] %s168_s26 }
  0x1c   : > { %s159_s28 = scalar_lea.sflag [#allocation3], %s158_s10  ;;  %s662_s29 = sshra.s32 %s169_s26, 4  ;;  %s663_s29 = int_to_ptr.hbm [resolvable:$true] %s662_s29 }
  0x1d   : > { %s664_s30 = scalar_lea.hbm %s663_s29, 8  ;;  %p666_p9 = pneg %p871_p7 }
  0x1e   : > { %p665_p8 = scmp.ne.s32.totalorder %s663_s29, %s664_s30  ;;  %s669_s17 = scalar_lea.hbm %s940_s0, 16 }
  0x1f   : > { %p670_p11 = scmp.lt.s32.totalorder %s663_s29, %s940_s0  ;;  %p671_p0 = scmp.lt.s32.totalorder %s669_s17, %s664_s30 }
  0x20   : > { %p667_p10 = pnand %p666_p9, %p665_p8 }
  0x21   : > { %p672_p2 = por %p671_p0, %p670_p11 }
  0x22   : > { %p668_p13 = pneg %p667_p10 }
  0x24   : > { %p673_p5 = pnand %p672_p2, %p668_p13 }
  0x26   : > { %676 = shalt.err (!%p673_p5)
}
  0x27   : > { %551 = dma.hbm_to_vmem [thread:$0]  (!%p871_p7), %s169_s26, 128, %s171_s25, %s159_s28  }
  0x28   : > { %179 = sbr.rel (%p817_p3) target bundleno = 610 (0x262), region = 32  ;;  %s888_s10 = sand.u32 (!%p817_p3), 1, %s754_s13  }
  0x29   : > { %s520_s21 = sshll.u32 (!%p817_p3), %s888_s10, 3  ;;  %s182_s22 = scalar_lea.sflag (!%p817_p3), [#allocation3], %s888_s10 }
  0x2a   : > { %s894_s23 = scalar_lea.vmem (!%p817_p3), [#allocation2], %s520_s21 }
  0x2d   : > { %737 = dma.done.wait (%p850_p12), %s182_s22, 128  }
  0x2e   : > { %739 = vsyncadd (%p850_p12), %s182_s22, 4294967168 }
  0x2f   : > { %741 = dma.done.wait (%p41_p1), [#allocation6], 6192  }
  0x30   : > { %743 = vsyncadd (%p41_p1), [#allocation6], 4294961104  ;;  %v266_v0 = vld [vmem:[#allocation5 + $0x170] sm:$0xff]  ;;  %v265_v1 = vld [vmem:[#allocation5 + $0x168] sm:$0xff]  ;;  %vm357_vm0 = vcmask 64512   ;;  %s526_s20 = sshll.u32 %s812_s19, 3 }
  0x31   : > { %v263_v2 = vld [vmem:[#allocation5 + $0x158] sm:$0xff]  ;;  %296 = vmatpush.msra.mxu1 %v266_v0  ;;  %276 = vmatpush.msra.mxu0 %v265_v1  ;;  %v262_v3 = vld [vmem:[#allocation5 + $0x150] sm:$0xff]  ;;  %v260_v4 = vld [vmem:[#allocation5 + $0x140] sm:$0xff]  ;;  %s418_s25 = scalar_lea.hbm %s943_s3, %s526_s20  ;;  %s218_s26 = scalar_lea.vmem [#allocation8], %s520_s21 }
  0x32   : > { %v259_v5 = vld [vmem:[#allocation5 + $0x138] sm:$0xff]  ;;  %v257_v6 = vld [vmem:[#allocation5 + $0x128] sm:$0xff]  ;;  %v256_v7 = vld [vmem:[#allocation5 + $0x120] sm:$0xff]  ;;  %s420_s27 = sshll.u32 %s218_s26, 4  ;;  %s422_s28 = sshll.u32 %s418_s25, 4  ;;  %s421_s27 = int_to_ptr.vmem [resolvable:$true] %s420_s27  ;;  %s423_s28 = int_to_ptr.hbm [resolvable:$true] %s422_s28 }
  0x33   : > { %297 = vmatpush.msra.mxu1 %v263_v2  ;;  %277 = vmatpush.msra.mxu0 %v262_v3  ;;  %v254_v8 = vld [vmem:[#allocation5 + $0x110] sm:$0xff]  ;;  %v253_v9 = vld [vmem:[#allocation5 + $0x108] sm:$0xff]  ;;  %v251_v10 = vld [vmem:[#allocation5 + $0xf8] sm:$0xff]  ;;  %s408_s19 = scalar_lea.sflag [#allocation4], %s888_s10  ;;  %s706_s29 = sshra.s32 %s423_s28, 4  ;;  %s707_s29 = int_to_ptr.hbm [resolvable:$true] %s706_s29 }
  0x34   : > { %v250_v11 = vld [vmem:[#allocation5 + $0xf0] sm:$0xff]  ;;  %v248_v12 = vld [vmem:[#allocation5 + $0xe0] sm:$0xff]  ;;  %v247_v13 = vld [vmem:[#allocation5 + $0xd8] sm:$0xff]  ;;  %s708_s30 = scalar_lea.hbm %s707_s29, 8  ;;  %s712_s17 = scalar_lea.hbm %s943_s3, 16 }
  0x35   : > { %298 = vmatpush.msra.mxu1 %v260_v4  ;;  %278 = vmatpush.msra.mxu0 %v259_v5  ;;  %v245_v14 = vld [vmem:[#allocation5 + $0xc8] sm:$0xff]  ;;  %v244_v15 = vld [vmem:[#allocation5 + $0xc0] sm:$0xff]  ;;  %v242_v16 = vld [vmem:[#allocation5 + $0xb0] sm:$0xff]  ;;  %p709_p1 = scmp.ne.s32.totalorder %s707_s29, %s708_s30  ;;  %p713_p12 = scmp.lt.s32.totalorder %s707_s29, %s943_s3 }
  0x36   : > { %v241_v17 = vld [vmem:[#allocation5 + $0xa8] sm:$0xff]  ;;  %v239_v18 = vld [vmem:[#allocation5 + $0x98] sm:$0xff]  ;;  %v238_v19 = vld [vmem:[#allocation5 + $0x90] sm:$0xff]  ;;  %p714_p7 = scmp.lt.s32.totalorder %s712_s17, %s708_s30 }
  0x37   : > { %299 = vmatpush.msra.mxu1 %v257_v6  ;;  %279 = vmatpush.msra.mxu0 %v256_v7  ;;  %v236_v20 = vld [vmem:[#allocation5 + $0x80] sm:$0xff]  ;;  %v235_v21 = vld [vmem:[#allocation5 + $0x78] sm:$0xff]  ;;  %v233_v22 = vld [vmem:[#allocation5 + $0x68] sm:$0xff]  ;;  %p710_p3 = pnand %p709_p1, %p857_p4 }
  0x38   : > { %v232_v23 = vld [vmem:[#allocation5 + $0x60] sm:$0xff]  ;;  %v230_v24 = vld [vmem:[#allocation5 + $0x50] sm:$0xff]  ;;  %v229_v25 = vld [vmem:[#allocation5 + $0x48] sm:$0xff]  ;;  %p715_p8 = por %p714_p7, %p713_p12 }
  0x39   : > { %300 = vmatpush.msra.mxu1 %v254_v8  ;;  %280 = vmatpush.msra.mxu0 %v253_v9  ;;  %v227_v26 = vld [vmem:[#allocation5 + $0x38] sm:$0xff]  ;;  %v226_v27 = vld [vmem:[#allocation5 + $0x30] sm:$0xff]  ;;  %v224_v28 = vld [vmem:[#allocation5 + $0x20] sm:$0xff]  ;;  %p711_p5 = pneg %p710_p3 }
  0x3a   : > { %v223_v29 = vld [vmem:[#allocation5 + $0x18] sm:$0xff]  ;;  %v221_v30 = vld [vmem:[#allocation5 + $0x8] sm:$0xff]  ;;  %v220_v31 = vld [vmem:[#allocation5] sm:$0xff] }
  0x3b   : > { %301 = vmatpush.msra.mxu1 %v251_v10  ;;  %281 = vmatpush.msra.mxu0 %v250_v11  ;;  %v219_v32 = vld [vmem:[%s894_s23] sm:$0xff]  ;;  %v264_v34 = vld [vmem:[#allocation5 + $0x160] sm:$0xff]  ;;  %v261_v35 = vld [vmem:[#allocation5 + $0x148] sm:$0xff]  ;;  %p716_p9 = pnand %p715_p8, %p711_p5 }
  0x3c   : > { %v267_v33 = vld [vmem:[#allocation5 + $0x178] sm:$0xff]  ;;  %v258_v36 = vld [vmem:[#allocation5 + $0x130] sm:$0xff]  ;;  %v252_v38 = vld [vmem:[#allocation5 + $0x100] sm:$0xff] }
  0x3d   : > { %302 = vmatpush.msra.mxu1 %v248_v12  ;;  %282 = vmatpush.msra.mxu0 %v247_v13  ;;  %v255_v37 = vld [vmem:[#allocation5 + $0x118] sm:$0xff]  ;;  %v249_v39 = vld [vmem:[#allocation5 + $0xe8] sm:$0xff]  ;;  %v246_v40 = vld [vmem:[#allocation5 + $0xd0] sm:$0xff] }
  0x3e   : > { %316 = vmatpush.msra.mxu2 %v267_v33  ;;  %v243_v41 = vld [vmem:[#allocation5 + $0xb8] sm:$0xff]  ;;  %v240_v42 = vld [vmem:[#allocation5 + $0xa0] sm:$0xff]  ;;  %v237_v43 = vld [vmem:[#allocation5 + $0x88] sm:$0xff] }
  0x3f   : > { %303 = vmatpush.msra.mxu1 %v245_v14  ;;  %283 = vmatpush.msra.mxu0 %v244_v15  ;;  %v268_v44 = vld [vmem:[#allocation7] sm:$0x7]  ;;  %v234_v45 = vld [vmem:[#allocation5 + $0x70] sm:$0xff]  ;;  %v231_v46 = vld [vmem:[#allocation5 + $0x58] sm:$0xff] }
  0x40   : > { %317 = vmatpush.msra.mxu2 %v264_v34  ;;  %v270_v47 = vperm.slane %v268_v44, 0  ;;  %v271_v48 = vperm.slane %v268_v44, 1  ;;  %v228_v49 = vld [vmem:[#allocation5 + $0x40] sm:$0xff]  ;;  %v225_v52 = vld [vmem:[#allocation5 + $0x28] sm:$0xff]  ;;  %v222_v55 = vld [vmem:[#allocation5 + $0x10] sm:$0xff]  ;;  %v272_v59 = vperm.slane %v268_v44, 2 }
  0x41   : > { %304 = vmatpush.msra.mxu1 %v242_v16  ;;  %284 = vmatpush.msra.mxu0 %v241_v17 }
  0x42   : > { %318 = vmatpush.msra.mxu2 %v261_v35 }
  0x43   : > { %305 = vmatpush.msra.mxu1 %v239_v18  ;;  %285 = vmatpush.msra.mxu0 %v238_v19 }
  0x44   : > { %319 = vmatpush.msra.mxu2 %v258_v36 }
  0x45   : > { %306 = vmatpush.msra.mxu1 %v236_v20  ;;  %286 = vmatpush.msra.mxu0 %v235_v21 }
  0x46   : > { %320 = vmatpush.msra.mxu2 %v255_v37 }
  0x47   : > { %307 = vmatpush.msra.mxu1 %v233_v22  ;;  %287 = vmatpush.msra.mxu0 %v232_v23 }
  0x48   : > { %321 = vmatpush.msra.mxu2 %v252_v38 }
  0x49   : > { %308 = vmatpush.msra.mxu1 %v230_v24  ;;  %288 = vmatpush.msra.mxu0 %v229_v25 }
  0x4a   : > { %322 = vmatpush.msra.mxu2 %v249_v39 }
  0x4b   : > { %309 = vmatpush.msra.mxu1 %v227_v26  ;;  %289 = vmatpush.msra.mxu0 %v226_v27 }
  0x4c   : > { %323 = vmatpush.msra.mxu2 %v246_v40 }
  0x4d   : > { %310 = vmatpush.msra.mxu1 %v224_v28  ;;  %290 = vmatpush.msra.mxu0 %v223_v29 }
  0x4e   : > { %324 = vmatpush.msra.mxu2 %v243_v41 }
  0x4f   : > { %311 = vmatpush.msra.mxu1 %v221_v30  ;;  %291 = vmatpush.msra.mxu0 %v220_v31 }
  0x50   : > { %312 = vmatmul.f32.vlgmr.msra.gmra.mxu1 %v219_v32  ;;  %292 = vmatmul.f32.vlgmr.msra.gmra.mxu0 %v219_v32 }
  0x51   : > { %325 = vmatpush.msra.mxu2 %v240_v42 }
  0x53   : > { %326 = vmatpush.msra.mxu2 %v237_v43 }
  0x55   : > { %327 = vmatpush.msra.mxu2 %v234_v45 }
  0x57   : > { %328 = vmatpush.msra.mxu2 %v231_v46 }
  0x59   : > { %329 = vmatpush.msra.mxu2 %v228_v49 }
  0x5b   : > { %330 = vmatpush.msra.mxu2 %v225_v52 }
  0x5d   : > { %331 = vmatpush.msra.mxu2 %v222_v55 }
  0x5e   : > { %332 = vmatmul.f32.vlgmr.msra.gmra.mxu2 %v219_v32 }
  0xcd   : > { %v313_v50 = vpop.f32.mrf.mxu1  ;;  %v293_v51 = vpop.f32.mrf.mxu0 }
  0xce   : > { %v294_v53 = vadd.f32 %v293_v51, %v270_v47  ;;  %v314_v54 = vadd.f32 %v313_v50, %v271_v48 }
  0xd0   : > { %v336_v56 = vmul.f32 0.35355338, %v294_v53  ;;  %352 = vmatpush.xpose.msra.mxu3 %v314_v54 }
  0xd3   : > { %353 = vmatmul.f32.vlgmr.msra.gmra.mxu3 %v336_v56 }
  0xe1   : > { %v333_v60 = vpop.f32.mrf.mxu2 }
  0xe2   : > { %v334_v61 = vadd.f32 %v333_v60, %v272_v59 }
  0xe4   : > { %385 = vmatpush.msrb.mxu3 %v334_v61 }
 0x156   : > { %v354_v57 = vpop.f32.mrf.mxu3 }
 0x157   : > { %v358_v58 = vsel %vm357_vm0, %v354_v57, -inf }
 0x158   : > { %359 = vmax.xlane.f32.xlu0 %v358_v58 }
 0x1cb   : > { %v360_v62 = vpop.xlane.xlu0 %359 }
 0x1cc   : > { %v361_v63 = vsub.f32 %v354_v57, %v360_v62 }
 0x1ce   : > { %v362_v0 = vmul.f32 1.442695, %v361_v63 }
 0x1d0   : > { %598 = vpow2.f32 %v362_v0 }
 0x1d6   : > { %v599_v1 = vpop.eup %598 }
 0x1d7   : > { %524 = vmatmul.msk.f32.vlgmr.msrb.gmra.mxu3 %vm357_vm0, %v599_v1  ;;  %v364_v2 = vsel %vm357_vm0, %v599_v1, 0.0 }
 0x1d8   : > { %365 = vadd.xlane.f32.xlu0 %v364_v2 }
 0x24b   : > { %v366_v3 = vpop.xlane.xlu0 %365 }
 0x24c   : > { %600 = vrcp.f32 %v366_v3  ;;  %v401_v7 = vand.u32 2147483648, %v366_v3  ;;  %v399_v9 = vand.u32 2147483647, %v366_v3  ;;  %vm395_vm2 = vweird.f32 %v366_v3 }
 0x24e   : > { %v402_v11 = vor.u32 1.1754944e-38, %v401_v7  ;;  %vm400_vm4 = vcmp.eq.f32.partialorder %v399_v9, 8.507059e+37 }
 0x252   : > { %v601_v4 = vpop.eup %600 }
 0x253   : > { %v391_v5 = vmul.f32 %v601_v4, %v366_v3  ;;  %vm396_vm1 = vweird.f32 %v601_v4 }
 0x254   : > { %vm397_vm3 = vmor %vm395_vm2, %vm396_vm1 }
 0x255   : > { %v392_v6 = vsub.f32 1.0, %v391_v5 }
 0x257   : > { %v393_v8 = vmul.f32 %v601_v4, %v392_v6 }
 0x259   : > { %v394_v10 = vadd.f32 %v601_v4, %v393_v8 }
 0x25a   : > { %v387_v13 = vpop.f32.mrf.mxu3 }
 0x25b   : > { %v398_v12 = vsel %vm397_vm3, %v601_v4, %v394_v10 }
 0x25c   : > { %v403_v14 = vsel %vm400_vm4, %v402_v11, %v398_v12 }
 0x25d   : > { %v405_v15 = vmul.f32 %v403_v14, %v387_v13 }
 0x25f   : > { %406 = vst [vmem:[%s218_s26] sm:$0xff] %v405_v15 }
 0x260   : > { %719 = shalt.err (!%p716_p9)
}
 0x261   : > { %539 = dma.vmem_to_hbm [thread:$0]  (%p857_p4), %s421_s27, 128, %s423_s28, %s408_s19  }
 0x262 PF: > { %s434_s10 = sand.u32 1, %s750_s12   ;;  %p950_p10 = scmp.ge.s32.totalorder %s762_s15, 2 }
 0x263   : > { %s435_s21 = scalar_lea.sflag [#allocation4], %s434_s10 }
 0x264   : > { %p553_p13 = pnand %p950_p10, %p861_p6 }
 0x266   : > { %p554_p11 = pneg %p553_p13 }
 0x268   : > { %745 = dma.done.wait (%p554_p11), %s435_s21, 128  }
 0x269   : > { %747 = vsyncadd (%p554_p11), %s435_s21, 4294967168  ;;  %p17_p0 = scmp.ge.s32.totalorder %s831_s4, 4   ;;  %s951_s12 = smov %s754_s13 }
 0x26a   : > { %s952_s13 = smov %s758_s14  ;;  %s953_s14 = smov %s842_s7 }
 0x26b   : > { %s954_s15 = smov %s831_s4  ;;  %19 = sbr.rel (!%p17_p0) target bundleno = 6 (0x6), region = 85 }
 0x270   :  { %441 = vsyncpa [#allocation3], 1 }
 0x271   :  { %443 = vsyncpa [#allocation3 + $0x1], 1 }
 0x272   :  { %444 = vsyncpa [#allocation6], 1 }
 0x273   :  { %445 = vsyncpa [#allocation4], 1 }
 0x274   :  { %447 = vsyncpa [#allocation4 + $0x1], 1 }

</bundles_post_ra>
